<compile_context>
chip_gen: v7x
topology: tpu7x:2x2x1
jax: 0.10.0
libtpu: 0.0.40
codegen_flags: <defaults>
</compile_context>

<pallas_src>
import functools

import jax
import jax.numpy as jnp
from jax.experimental import pallas as pl
from jax.experimental.pallas import tpu as pltpu

NUM_CELLS = 256
OUT_PAD = 128  # lane-dense padded width of the final layer


def _round_up(x: int, m: int) -> int:
    return ((x + m - 1) // m) * m


def qnet_kernel(obs_ref, act_ref, w1o_ref, w1a_ref, b1_ref,
                w2_ref, b2_ref, w3_ref, b3_ref, o_ref):
    # obs: (TILE_B, 3) f32, act: (TILE_B, 1) f32
    # w1o: (3, 256) bf16, w1a: (1, 256) f32, b1: (1, 256) f32
    # w2:  (256, 256) bf16, b2: (1, 256) f32
    # w3:  (256, 128) bf16 (zero-padded), b3: (1, 128) f32 (zero-padded)
    # o:   (TILE_B, 128) f32  (only column 0 is the real q-value)
    obs = obs_ref[...].astype(jnp.bfloat16)

    # Layer 1: obs part on the MXU, action column as a rank-1 VPU broadcast.
    h1 = jnp.dot(obs, w1o_ref[...], preferred_element_type=jnp.float32)
    h1 = h1 + act_ref[...] * w1a_ref[...] + b1_ref[...]
    h1 = jnp.maximum(h1, 0.0).astype(jnp.bfloat16)

    # Layer 2 (dominant 256x256 matmul), bf16 operands / f32 accumulation.
    h2 = jnp.dot(h1, w2_ref[...], preferred_element_type=jnp.float32) + b2_ref[...]
    h2 = jnp.maximum(h2, 0.0).astype(jnp.bfloat16)

    # Layer 3: 256 -> 128 (lane-dense, zero-padded); real output is column 0.
    q = jnp.dot(h2, w3_ref[...], preferred_element_type=jnp.float32) + b3_ref[...]
    o_ref[...] = q.astype(o_ref.dtype)


def _prepare_params(params):
    """Split / cast / pad the f32 nn.Linear-style params into the kernel layout."""
    w1, b1, w2, b2, w3, b3 = params
    w1_obs = w1[:3, :].astype(jnp.bfloat16)          # (3, 256)
    w1_act = w1[3:4, :].astype(jnp.float32)          # (1, 256) rank-1 VPU term
    w2_b = w2.astype(jnp.bfloat16)                   # (256, 256)
    w3_pad = jnp.zeros((NUM_CELLS, OUT_PAD), jnp.bfloat16).at[:, :1].set(
        w3.astype(jnp.bfloat16))                     # (256, 128)
    b3_pad = jnp.zeros((1, OUT_PAD), jnp.float32).at[:, :1].set(b3)  # (1, 128)
    return (w1_obs, w1_act, b1.astype(jnp.float32), w2_b, b2.astype(jnp.float32),
            w3_pad, b3_pad)


@functools.partial(jax.jit, static_argnames=("tile_b",))
def pendulum_q_forward(observation, action, params, *, tile_b=256):
    """observation: (B, 3), action: (B, 1) -> q-value (B, 1)."""
    B = observation.shape[0]
    w1_obs, w1_act, b1, w2, b2, w3_pad, b3_pad = _prepare_params(params)

    # Pad batch to a multiple of the tile (tile itself a multiple of 16 for bf16).
    tb = min(tile_b, _round_up(B, 16))
    B_pad = _round_up(B, tb)
    obs_p = jnp.pad(observation.astype(jnp.float32), ((0, B_pad - B), (0, 0)))
    act_p = jnp.pad(action.astype(jnp.float32), ((0, B_pad - B), (0, 0)))

    grid = (B_pad // tb,)

    # Activations tile over the batch; weights/biases are grid-invariant (resident).
    in_specs = [
        pl.BlockSpec((tb, 3), lambda i: (i, 0)),                 # obs
        pl.BlockSpec((tb, 1), lambda i: (i, 0)),                 # act
        pl.BlockSpec((3, NUM_CELLS), lambda i: (0, 0)),          # w1_obs
        pl.BlockSpec((1, NUM_CELLS), lambda i: (0, 0)),          # w1_act
        pl.BlockSpec((1, NUM_CELLS), lambda i: (0, 0)),          # b1
        pl.BlockSpec((NUM_CELLS, NUM_CELLS), lambda i: (0, 0)),  # w2
        pl.BlockSpec((1, NUM_CELLS), lambda i: (0, 0)),          # b2
        pl.BlockSpec((NUM_CELLS, OUT_PAD), lambda i: (0, 0)),    # w3 (padded)
        pl.BlockSpec((1, OUT_PAD), lambda i: (0, 0)),            # b3 (padded)
    ]
    out_specs = pl.BlockSpec((tb, OUT_PAD), lambda i: (i, 0))

    param_bytes = (w1_obs.size + w2.size + w3_pad.size) * 2 + \
                  (w1_act.size + b1.size + b2.size + b3_pad.size) * 4
    cost = pl.CostEstimate(
        flops=2 * B_pad * (4 * NUM_CELLS + NUM_CELLS * NUM_CELLS + NUM_CELLS * OUT_PAD),
        transcendentals=0,
        bytes_accessed=B_pad * (4 * 4 + OUT_PAD * 4) + param_bytes,
    )

    q_full = pl.pallas_call(
        qnet_kernel,
        out_shape=jax.ShapeDtypeStruct((B_pad, OUT_PAD), jnp.float32),
        grid=grid,
        in_specs=in_specs,
        out_specs=out_specs,
        compiler_params=pltpu.CompilerParams(dimension_semantics=("parallel",)),
        cost_estimate=cost,
    )(obs_p, act_p, w1_obs, w1_act, b1, w2, b2, w3_pad, b3_pad)

    # Real q-values live in column 0 of the lane-dense slab; drop batch padding.
    return q_full[:B, :1]


def init_params(key, num_cells=NUM_CELLS, in_dim=4):
    """Deterministic init mimicking nn.Linear (uniform(-1/sqrt(fan_in), +1/sqrt(fan_in)))."""
    def linear(key, fan_in, fan_out):
        kw, kb = jax.random.split(key)
        bound = 1.0 / jnp.sqrt(jnp.float32(fan_in))
        # Stored as (in, out): transpose of PyTorch's (out, in) weight.
        w = jax.random.uniform(kw, (fan_in, fan_out), jnp.float32, -bound, bound)
        b = jax.random.uniform(kb, (1, fan_out), jnp.float32, -bound, bound)
        return w, b

    k1, k2, k3 = jax.random.split(key, 3)
    w1, b1 = linear(k1, in_dim, num_cells)
    w2, b2 = linear(k2, num_cells, num_cells)
    w3, b3 = linear(k3, num_cells, 1)
    return (w1, b1, w2, b2, w3, b3)


def reference_forward(observation, action, params):
    """Pure-JAX reference replicating the kernel's bf16-operand / f32-accum math."""
    w1, b1, w2, b2, w3, b3 = params
    h1 = jnp.dot(observation.astype(jnp.bfloat16), w1[:3, :].astype(jnp.bfloat16),
                 preferred_element_type=jnp.float32)
    h1 = h1 + action * w1[3:4, :] + b1
    h1 = jnp.maximum(h1, 0.0).astype(jnp.bfloat16)
    h2 = jnp.dot(h1, w2.astype(jnp.bfloat16), preferred_element_type=jnp.float32) + b2
    h2 = jnp.maximum(h2, 0.0).astype(jnp.bfloat16)
    return jnp.dot(h2, w3.astype(jnp.bfloat16), preferred_element_type=jnp.float32) + b3


if __name__ == "__main__":
    key = jax.random.PRNGKey(0)
    k_obs, k_act, k_param, k_obs2, k_act2 = jax.random.split(key, 5)

    params = init_params(k_param)

    # Small batch (single tile, padded to 16 rows).
    batch = 8
    observation = jax.random.normal(k_obs, (batch, 3), jnp.float32)  # Pendulum-v1 obs dim = 3
    action = jax.random.normal(k_act, (batch, 1), jnp.float32)       # Pendulum-v1 act dim = 1

    q = pendulum_q_forward(observation, action, params)
    q = jax.block_until_ready(q)
    q_ref = reference_forward(observation, action, params)
    assert q.shape == (batch, 1)
    assert jnp.allclose(q, q_ref, atol=1e-3, rtol=1e-3)

    # Larger, non-tile-divisible batch (exercises the batch grid + padding path).
    batch2 = 300
    observation2 = jax.random.normal(k_obs2, (batch2, 3), jnp.float32)
    action2 = jax.random.normal(k_act2, (batch2, 1), jnp.float32)
    q2 = jax.block_until_ready(pendulum_q_forward(observation2, action2, params))
    q2_ref = reference_forward(observation2, action2, params)
    assert q2.shape == (batch2, 1)
    assert jnp.allclose(q2, q2_ref, atol=1e-3, rtol=1e-3)

    print("KERNEL_OK")
</pallas_src>

<mosaic_0001>
module attributes {stable_mosaic.version = 11 : i64} {
  func.func @qnet_kernel(%arg0: i32, %arg1: memref<16x3xf32, #tpu.memory_space<vmem>>, %arg2: memref<16x1xf32, #tpu.memory_space<vmem>>, %arg3: memref<3x256xbf16, #tpu.memory_space<vmem>>, %arg4: memref<1x256xf32, #tpu.memory_space<vmem>>, %arg5: memref<1x256xf32, #tpu.memory_space<vmem>>, %arg6: memref<256x256xbf16, #tpu.memory_space<vmem>>, %arg7: memref<1x256xf32, #tpu.memory_space<vmem>>, %arg8: memref<256x128xbf16, #tpu.memory_space<vmem>>, %arg9: memref<1x128xf32, #tpu.memory_space<vmem>>, %arg10: memref<16x128xf32, #tpu.memory_space<vmem>>) attributes {dimension_semantics = [#tpu.dimension_semantics<parallel>], iteration_bounds = array<i64: 1>, scalar_prefetch = 0 : i64, scratch_operands = 0 : i64, tpu.core_type = #tpu.core_type<tc>, window_params = [{transform_indices = @transform_0, window_bounds = array<i64: 16, 3>}, {transform_indices = @transform_1, window_bounds = array<i64: 16, 1>}, {pipeline_mode = #tpu.pipeline_mode<synchronous>, transform_indices = @transform_2, window_bounds = array<i64: 3, 256>}, {pipeline_mode = #tpu.pipeline_mode<synchronous>, transform_indices = @transform_3, window_bounds = array<i64: 1, 256>}, {pipeline_mode = #tpu.pipeline_mode<synchronous>, transform_indices = @transform_4, window_bounds = array<i64: 1, 256>}, {pipeline_mode = #tpu.pipeline_mode<synchronous>, transform_indices = @transform_5, window_bounds = array<i64: 256, 256>}, {pipeline_mode = #tpu.pipeline_mode<synchronous>, transform_indices = @transform_6, window_bounds = array<i64: 1, 256>}, {pipeline_mode = #tpu.pipeline_mode<synchronous>, transform_indices = @transform_7, window_bounds = array<i64: 256, 128>}, {pipeline_mode = #tpu.pipeline_mode<synchronous>, transform_indices = @transform_8, window_bounds = array<i64: 1, 128>}, {transform_indices = @transform_9, window_bounds = array<i64: 16, 128>}]} {
    %c0 = arith.constant 0 : index
    %c0_0 = arith.constant 0 : index
    %0 = vector.load %arg1[%c0, %c0_0] : memref<16x3xf32, #tpu.memory_space<vmem>>, vector<16x3xf32>
    %1 = arith.truncf %0 : vector<16x3xf32> to vector<16x3xbf16>
    %c0_1 = arith.constant 0 : index
    %c0_2 = arith.constant 0 : index
    %2 = vector.load %arg3[%c0_1, %c0_2] : memref<3x256xbf16, #tpu.memory_space<vmem>>, vector<3x256xbf16>
    %cst = arith.constant dense<0.000000e+00> : vector<16x256xf32>
    %3 = tpu.matmul %1, %2, %cst {dimension_numbers = #tpu.dot_dimension_numbers<[1], [0], [0], [1], [0, 0, 1, 1], [], []>} : vector<16x3xbf16>, vector<3x256xbf16>, vector<16x256xf32> -> vector<16x256xf32>
    %c0_3 = arith.constant 0 : index
    %c0_4 = arith.constant 0 : index
    %4 = vector.load %arg2[%c0_3, %c0_4] : memref<16x1xf32, #tpu.memory_space<vmem>>, vector<16x1xf32>
    %c0_5 = arith.constant 0 : index
    %c0_6 = arith.constant 0 : index
    %5 = vector.load %arg4[%c0_5, %c0_6] : memref<1x256xf32, #tpu.memory_space<vmem>>, vector<1x256xf32>
    %6 = vector.broadcast %4 : vector<16x1xf32> to vector<16x256xf32>
    %7 = vector.broadcast %5 : vector<1x256xf32> to vector<16x256xf32>
    %8 = arith.mulf %6, %7 : vector<16x256xf32>
    %9 = arith.addf %3, %8 : vector<16x256xf32>
    %c0_7 = arith.constant 0 : index
    %c0_8 = arith.constant 0 : index
    %10 = vector.load %arg5[%c0_7, %c0_8] : memref<1x256xf32, #tpu.memory_space<vmem>>, vector<1x256xf32>
    %11 = vector.broadcast %10 : vector<1x256xf32> to vector<16x256xf32>
    %12 = arith.addf %9, %11 : vector<16x256xf32>
    %cst_9 = arith.constant 0.000000e+00 : f32
    %13 = vector.broadcast %cst_9 : f32 to vector<16x256xf32>
    %14 = arith.maximumf %12, %13 : vector<16x256xf32>
    %15 = arith.truncf %14 : vector<16x256xf32> to vector<16x256xbf16>
    %c0_10 = arith.constant 0 : index
    %c0_11 = arith.constant 0 : index
    %16 = vector.load %arg6[%c0_10, %c0_11] : memref<256x256xbf16, #tpu.memory_space<vmem>>, vector<256x256xbf16>
    %cst_12 = arith.constant dense<0.000000e+00> : vector<16x256xf32>
    %17 = tpu.matmul %15, %16, %cst_12 {dimension_numbers = #tpu.dot_dimension_numbers<[1], [0], [0], [1], [0, 0, 1, 1], [], []>} : vector<16x256xbf16>, vector<256x256xbf16>, vector<16x256xf32> -> vector<16x256xf32>
    %c0_13 = arith.constant 0 : index
    %c0_14 = arith.constant 0 : index
    %18 = vector.load %arg7[%c0_13, %c0_14] : memref<1x256xf32, #tpu.memory_space<vmem>>, vector<1x256xf32>
    %19 = vector.broadcast %18 : vector<1x256xf32> to vector<16x256xf32>
    %20 = arith.addf %17, %19 : vector<16x256xf32>
    %cst_15 = arith.constant 0.000000e+00 : f32
    %21 = vector.broadcast %cst_15 : f32 to vector<16x256xf32>
    %22 = arith.maximumf %20, %21 : vector<16x256xf32>
    %23 = arith.truncf %22 : vector<16x256xf32> to vector<16x256xbf16>
    %c0_16 = arith.constant 0 : index
    %c0_17 = arith.constant 0 : index
    %24 = vector.load %arg8[%c0_16, %c0_17] : memref<256x128xbf16, #tpu.memory_space<vmem>>, vector<256x128xbf16>
    %cst_18 = arith.constant dense<0.000000e+00> : vector<16x128xf32>
    %25 = tpu.matmul %23, %24, %cst_18 {dimension_numbers = #tpu.dot_dimension_numbers<[1], [0], [0], [1], [0, 0, 1, 1], [], []>} : vector<16x256xbf16>, vector<256x128xbf16>, vector<16x128xf32> -> vector<16x128xf32>
    %c0_19 = arith.constant 0 : index
    %c0_20 = arith.constant 0 : index
    %26 = vector.load %arg9[%c0_19, %c0_20] : memref<1x128xf32, #tpu.memory_space<vmem>>, vector<1x128xf32>
    %27 = vector.broadcast %26 : vector<1x128xf32> to vector<16x128xf32>
    %28 = arith.addf %25, %27 : vector<16x128xf32>
    %c0_21 = arith.constant 0 : index
    %c0_22 = arith.constant 0 : index
    %29 = vector.load %arg10[%c0_21, %c0_22] : memref<16x128xf32, #tpu.memory_space<vmem>>, vector<16x128xf32>
    tpu.vector_store %arg10[%c0_21, %c0_22], %28 {strides = array<i32>} : memref<16x128xf32, #tpu.memory_space<vmem>>, vector<16x128xf32>,
    return
  }
  func.func @transform_0(%arg0: i32) -> (i32, i32) {
    %c0_i32 = arith.constant 0 : i32
    %c0_i32_0 = arith.constant 0 : i32
    return %arg0, %c0_i32 : i32, i32
  }
  func.func @transform_1(%arg0: i32) -> (i32, i32) {
    %c0_i32 = arith.constant 0 : i32
    %c0_i32_0 = arith.constant 0 : i32
    return %arg0, %c0_i32 : i32, i32
  }
  func.func @transform_2(%arg0: i32) -> (i32, i32) {
    %c0_i32 = arith.constant 0 : i32
    %c0_i32_0 = arith.constant 0 : i32
    %c0_i32_1 = arith.constant 0 : i32
    return %c0_i32, %c0_i32_0 : i32, i32
  }
  func.func @transform_3(%arg0: i32) -> (i32, i32) {
    %c0_i32 = arith.constant 0 : i32
    %c0_i32_0 = arith.constant 0 : i32
    %c0_i32_1 = arith.constant 0 : i32
    return %c0_i32, %c0_i32_0 : i32, i32
  }
  func.func @transform_4(%arg0: i32) -> (i32, i32) {
    %c0_i32 = arith.constant 0 : i32
    %c0_i32_0 = arith.constant 0 : i32
    %c0_i32_1 = arith.constant 0 : i32
    return %c0_i32, %c0_i32_0 : i32, i32
  }
  func.func @transform_5(%arg0: i32) -> (i32, i32) {
    %c0_i32 = arith.constant 0 : i32
    %c0_i32_0 = arith.constant 0 : i32
    %c0_i32_1 = arith.constant 0 : i32
    return %c0_i32, %c0_i32_0 : i32, i32
  }
  func.func @transform_6(%arg0: i32) -> (i32, i32) {
    %c0_i32 = arith.constant 0 : i32
    %c0_i32_0 = arith.constant 0 : i32
    %c0_i32_1 = arith.constant 0 : i32
    return %c0_i32, %c0_i32_0 : i32, i32
  }
  func.func @transform_7(%arg0: i32) -> (i32, i32) {
    %c0_i32 = arith.constant 0 : i32
    %c0_i32_0 = arith.constant 0 : i32
    %c0_i32_1 = arith.constant 0 : i32
    return %c0_i32, %c0_i32_0 : i32, i32
  }
  func.func @transform_8(%arg0: i32) -> (i32, i32) {
    %c0_i32 = arith.constant 0 : i32
    %c0_i32_0 = arith.constant 0 : i32
    %c0_i32_1 = arith.constant 0 : i32
    return %c0_i32, %c0_i32_0 : i32, i32
  }
  func.func @transform_9(%arg0: i32) -> (i32, i32) {
    %c0_i32 = arith.constant 0 : i32
    %c0_i32_0 = arith.constant 0 : i32
    return %arg0, %c0_i32 : i32, i32
  }
}

</mosaic_0001>

<bundles_post_ra>
// kernel: pendulum_q_forward.1
= control target key start
LH: loop header
LB: loop body
LE: loop exit
PB: predicated region body
PF: predicated region fallthrough
CT: control target
= control target key end

     0   :  { %vm78_vm0 = vcmask 1040384   ;;  %vm79_vm1 = vcmask 1041408   ;;  %v728_v1 = vmov 65535   ;;  %v729_v3 = vmov 0   ;;  %s957_s2 = inlined_call_operand.vmem [shape: bf16[3,256], index: 2, kind: input, shape index: {}]   ;;  %s958_s0 = inlined_call_operand.vmem [shape: f32[16,3], index: 0, kind: input, shape index: {}]   ;;  %s959_s1 = inlined_call_operand.vmem [shape: f32[16,1], index: 1, kind: input, shape index: {}]   ;;  %s960_s5 = inlined_call_operand.vmem [shape: bf16[256,256], index: 5, kind: input, shape index: {}]   ;;  %s961_s7 = inlined_call_operand.vmem [shape: bf16[256,128], index: 7, kind: input, shape index: {}]   ;;  %s962_s3 = inlined_call_operand.vmem [shape: f32[1,256], index: 3, kind: input, shape index: {}]   ;;  %s963_s4 = inlined_call_operand.vmem [shape: f32[1,256], index: 4, kind: input, shape index: {}]   ;;  %s964_s6 = inlined_call_operand.vmem [shape: f32[1,256], index: 6, kind: input, shape index: {}]   ;;  %s965_s8 = inlined_call_operand.vmem [shape: f32[1,128], index: 8, kind: input, shape index: {}]   ;;  %s966_s9 = inlined_call_operand.vmem [shape: f32[16,128], index: 9, kind: output, shape index: {}]  }
   0x1   :  { %v588_v0 = vld.sshfl [vmem:[%s957_s2] sm:$0x33 pattern:$0x76325410]  ;;  %v80_v2 = vsel %vm78_vm0, 4294967295, %v728_v1  ;;  %120 = vmatprep.mubr.bf16.mxu0 %v729_v3  ;;  %663 = vset.pattern.permute.xlu0 %v729_v3  ;;  %v34_v7 = vld [vmem:[%s958_s0 + $0x8] sm:$0xff]  ;;  %v51_v56 = vlaneseq }
   0x2   :  { %v33_v4 = vld [vmem:[%s958_s0] sm:$0xff]  ;;  %v73_v5 = vcombine.high %v588_v0, %v588_v0  ;;  %v81_v6 = vsel %vm79_vm1, %v80_v2, 0  ;;  %v38_v9 = vld [vmem:[%s959_s1 + $0x8] sm:$0xff]  ;;  %v667_v14 = vld [vmem:[%s960_s5 + $0x14] ss:$8 sps:$4 sm:$0xff]   ;;  %vm74_vm2 = vcmask 23552  }
   0x3   :  { %v37_v8 = vld [vmem:[%s959_s1] sm:$0xff]  ;;  %v83_v10 = vand.u32 %v588_v0, %v81_v6  ;;  %v35_v15 = vpack.c.bf16 %v34_v7, %v33_v4  ;;  %v669_v16 = vld [vmem:[%s960_s5 + $0x10] ss:$8 sps:$4 sm:$0xff]   ;;  %v673_v19 = vld [vmem:[%s960_s5 + $0x34] ss:$8 sps:$4 sm:$0xff]   ;;  %v52_v57 = vshrl.u32 %v51_v56, 7 }
   0x4   :  { %42 = vperm.xlu0 %663, %v37_v8   ;;  %v664_v11 = vld [vmem:[%s960_s5 + $0x4] ss:$8 sps:$4 sm:$0xff]   ;;  %v86_v12 = vand.u32 %v81_v6, %v73_v5  ;;  %v666_v13 = vld [vmem:[%s960_s5] ss:$8 sps:$4 sm:$0xff]   ;;  %v675_v20 = vld [vmem:[%s960_s5 + $0x30] ss:$8 sps:$4 sm:$0xff]  }
   0x5   :  { %357 = vmatprep.subr.bf16.mxu1 %v664_v11  ;;  %v670_v17 = vld [vmem:[%s960_s5 + $0x24] ss:$8 sps:$4 sm:$0xff]   ;;  %v672_v18 = vld [vmem:[%s960_s5 + $0x20] ss:$8 sps:$4 sm:$0xff]   ;;  %v679_v23 = vld [vmem:[%s960_s5 + $0x54] ss:$8 sps:$4 sm:$0xff]  }
   0x6   :  { %88 = vmatprep.subr.bf16.mxu0 %v86_v12  ;;  %358 = vmatpush1.bf16.msra.mxu1 %v666_v13  ;;  %v676_v21 = vld [vmem:[%s960_s5 + $0x44] ss:$8 sps:$4 sm:$0xff]   ;;  %v678_v22 = vld [vmem:[%s960_s5 + $0x40] ss:$8 sps:$4 sm:$0xff]   ;;  %v681_v24 = vld [vmem:[%s960_s5 + $0x50] ss:$8 sps:$4 sm:$0xff]  }
   0x7   :  { %89 = vmatpush1.bf16.msra.mxu0 %v83_v10  ;;  %359 = vmatprep.subr.bf16.mxu1 %v667_v14  ;;  %v682_v25 = vld [vmem:[%s960_s5 + $0x64] ss:$8 sps:$4 sm:$0xff]   ;;  %v684_v26 = vld [vmem:[%s960_s5 + $0x60] ss:$8 sps:$4 sm:$0xff]   ;;  %v685_v27 = vld [vmem:[%s960_s5 + $0x74] ss:$8 sps:$4 sm:$0xff]  }
   0x8   :  { %47 = vperm.xlu0 %663, %v38_v9   ;;  %v687_v28 = vld [vmem:[%s960_s5 + $0x70] ss:$8 sps:$4 sm:$0xff]   ;;  %v688_v29 = vld [vmem:[%s960_s5 + $0x84] ss:$8 sps:$4 sm:$0xff]   ;;  %v690_v30 = vld [vmem:[%s960_s5 + $0x80] ss:$8 sps:$4 sm:$0xff]  }
   0x9   :  { %v691_v31 = vld [vmem:[%s960_s5 + $0x94] ss:$8 sps:$4 sm:$0xff]   ;;  %v693_v32 = vld [vmem:[%s960_s5 + $0x90] ss:$8 sps:$4 sm:$0xff]   ;;  %v694_v33 = vld [vmem:[%s960_s5 + $0xa4] ss:$8 sps:$4 sm:$0xff]  }
   0xa   :  { %589 = vmatmul.mubr.msk.bf16.vlgmr.msra.gmra.mrb[0].mxu0 %vm74_vm2, %v35_v15  ;;  %360 = vmatpush1.bf16.msra.mxu1 %v669_v16  ;;  %v696_v34 = vld [vmem:[%s960_s5 + $0xa0] ss:$8 sps:$4 sm:$0xff]   ;;  %v697_v35 = vld [vmem:[%s960_s5 + $0xb4] ss:$8 sps:$4 sm:$0xff]   ;;  %v699_v36 = vld [vmem:[%s960_s5 + $0xb0] ss:$8 sps:$4 sm:$0xff]  }
   0xb   :  { %361 = vmatprep.subr.bf16.mxu1 %v670_v17  ;;  %v700_v37 = vld [vmem:[%s960_s5 + $0xc4] ss:$8 sps:$4 sm:$0xff]   ;;  %v702_v38 = vld [vmem:[%s960_s5 + $0xc0] ss:$8 sps:$4 sm:$0xff]   ;;  %v703_v39 = vld [vmem:[%s960_s5 + $0xd4] ss:$8 sps:$4 sm:$0xff]  }
   0xc   :  { %v705_v40 = vld [vmem:[%s960_s5 + $0xd0] ss:$8 sps:$4 sm:$0xff]   ;;  %v706_v41 = vld [vmem:[%s960_s5 + $0xe4] ss:$8 sps:$4 sm:$0xff]   ;;  %v708_v42 = vld [vmem:[%s960_s5 + $0xe0] ss:$8 sps:$4 sm:$0xff]  }
   0xd   :  { %v709_v43 = vld [vmem:[%s960_s5 + $0xf4] ss:$8 sps:$4 sm:$0xff]   ;;  %v711_v44 = vld [vmem:[%s960_s5 + $0xf0] ss:$8 sps:$4 sm:$0xff]   ;;  %v712_v45 = vld [vmem:[%s961_s7 + $0x40] sm:$0xff]   ;;  %v53_v58 = vsub.s32 0, %v52_v57 }
   0xe   :  { %362 = vmatpush1.bf16.msra.mxu1 %v672_v18  ;;  %v713_v46 = vld [vmem:[%s961_s7] sm:$0xff]   ;;  %639 = vmatprep.subr.bf16.mxu0 %v712_v45  ;;  %v714_v47 = vld [vmem:[%s961_s7 + $0x48] sm:$0xff]   ;;  %v716_v49 = vld [vmem:[%s961_s7 + $0x50] sm:$0xff]   ;;  %v57_v60 = vsub.s32 1, %v52_v57 }
   0xf   :  { %363 = vmatprep.subr.bf16.mxu1 %v673_v19  ;;  %640 = vmatpush3.bf16.msra.mxu0 %v713_v46  ;;  %v715_v48 = vld [vmem:[%s961_s7 + $0x8] sm:$0xff]   ;;  %v717_v50 = vld [vmem:[%s961_s7 + $0x10] sm:$0xff]   ;;  %v718_v51 = vld [vmem:[%s961_s7 + $0x58] sm:$0xff]  }
  0x10   :  { %641 = vmatprep.subr.bf16.mxu0 %v714_v47  ;;  %v719_v52 = vld [vmem:[%s961_s7 + $0x18] sm:$0xff]   ;;  %v720_v53 = vld [vmem:[%s961_s7 + $0x60] sm:$0xff]   ;;  %v722_v55 = vld [vmem:[%s961_s7 + $0x68] sm:$0xff]  }
  0x11   :  { %v721_v54 = vld [vmem:[%s961_s7 + $0x20] sm:$0xff]  }
  0x12   :  { %364 = vmatpush1.bf16.msra.mxu1 %v675_v20  ;;  %v39_v59 = vld [vmem:[%s962_s3] sm:$0x3] }
  0x13   :  { %365 = vmatprep.subr.bf16.mxu1 %v676_v21  ;;  %642 = vmatpush3.bf16.msra.mxu0 %v715_v48  ;;  %v54_v62 = vrot.slane %v39_v59, %v53_v58  ;;  %v58_v63 = vrot.slane %v39_v59, %v57_v60  ;;  %v131_v0 = vld [vmem:[%s963_s4] sm:$0x3] }
  0x14   :  { %643 = vmatprep.subr.bf16.mxu0 %v716_v49  ;;  %v136_v3 = vrot.slane %v131_v0, %v53_v58  ;;  %v140_v6 = vrot.slane %v131_v0, %v57_v60  ;;  %v622_v49 = vld [vmem:[%s965_s8] ss:$0 sm:$0xff] }
  0x16   :  { %366 = vmatpush1.bf16.msra.mxu1 %v678_v22 }
  0x17   :  { %367 = vmatprep.subr.bf16.mxu1 %v679_v23  ;;  %644 = vmatpush3.bf16.msra.mxu0 %v717_v50 }
  0x18   :  { %645 = vmatprep.subr.bf16.mxu0 %v718_v51 }
  0x1a   :  { %368 = vmatpush1.bf16.msra.mxu1 %v681_v24 }
  0x1b   :  { %369 = vmatprep.subr.bf16.mxu1 %v682_v25  ;;  %646 = vmatpush3.bf16.msra.mxu0 %v719_v52 }
  0x1c   :  { %647 = vmatprep.subr.bf16.mxu0 %v720_v53 }
  0x1e   :  { %370 = vmatpush1.bf16.msra.mxu1 %v684_v26  ;;  %v723_v26 = vld [vmem:[%s961_s7 + $0x28] sm:$0xff]  }
  0x1f   :  { %371 = vmatprep.subr.bf16.mxu1 %v685_v27  ;;  %648 = vmatpush3.bf16.msra.mxu0 %v721_v54  ;;  %v724_v27 = vld [vmem:[%s961_s7 + $0x70] sm:$0xff]  }
  0x20   :  { %649 = vmatprep.subr.bf16.mxu0 %v722_v55 }
  0x22   :  { %372 = vmatpush1.bf16.msra.mxu1 %v687_v28  ;;  %v725_v28 = vld [vmem:[%s961_s7 + $0x30] sm:$0xff]  }
  0x23   :  { %373 = vmatprep.subr.bf16.mxu1 %v688_v29  ;;  %650 = vmatpush3.bf16.msra.mxu0 %v723_v26  ;;  %v726_v29 = vld [vmem:[%s961_s7 + $0x78] sm:$0xff]  }
  0x24   :  { %651 = vmatprep.subr.bf16.mxu0 %v724_v27 }
  0x26   :  { %374 = vmatpush1.bf16.msra.mxu1 %v690_v30  ;;  %v727_v30 = vld [vmem:[%s961_s7 + $0x38] sm:$0xff]  }
  0x27   :  { %375 = vmatprep.subr.bf16.mxu1 %v691_v31  ;;  %652 = vmatpush3.bf16.msra.mxu0 %v725_v28  ;;  %v185_v31 = vld [vmem:[%s964_s6] sm:$0x3] }
  0x28   :  { %653 = vmatprep.subr.bf16.mxu0 %v726_v29 }
  0x2a   :  { %376 = vmatpush1.bf16.msra.mxu1 %v693_v32  ;;  %v190_v32 = vrot.slane %v185_v31, %v53_v58 }
  0x2b   :  { %377 = vmatprep.subr.bf16.mxu1 %v694_v33  ;;  %654 = vmatpush3.bf16.msra.mxu0 %v727_v30  ;;  %v194_v33 = vrot.slane %v185_v31, %v57_v60 }
  0x2e   :  { %378 = vmatpush1.bf16.msra.mxu1 %v696_v34 }
  0x2f   :  { %379 = vmatprep.subr.bf16.mxu1 %v697_v35 }
  0x32   :  { %380 = vmatpush1.bf16.msra.mxu1 %v699_v36 }
  0x33   :  { %381 = vmatprep.subr.bf16.mxu1 %v700_v37 }
  0x36   :  { %382 = vmatpush1.bf16.msra.mxu1 %v702_v38 }
  0x37   :  { %383 = vmatprep.subr.bf16.mxu1 %v703_v39 }
  0x3a   :  { %384 = vmatpush1.bf16.msra.mxu1 %v705_v40 }
  0x3b   :  { %385 = vmatprep.subr.bf16.mxu1 %v706_v41 }
  0x3e   :  { %386 = vmatpush1.bf16.msra.mxu1 %v708_v42 }
  0x3f   :  { %387 = vmatprep.subr.bf16.mxu1 %v709_v43 }
  0x42   :  { %388 = vmatpush1.bf16.msra.mxu1 %v711_v44 }
  0x83   :  { %v43_v61 = vpop.permute.xlu0 %42 }
  0x84   :  { %v61_v1 = vmul.f32 %v54_v62, %v43_v61  ;;  %v62_v4 = vmul.f32 %v58_v63, %v43_v61 }
  0x87   :  { %v48_v2 = vpop.permute.xlu0 %47 }
  0x88   :  { %v63_v7 = vmul.f32 %v54_v62, %v48_v2  ;;  %v64_v10 = vmul.f32 %v58_v63, %v48_v2 }
  0xdd   :  { %v122_v5 = vpop.f32.mrb[0].mxu0 }
  0xde   :  { %v123_v8 = vadd.f32 %v122_v5, %v61_v1  ;;  %v124_v9 = vpop.f32.mrb[1].mxu0 }
  0xdf   :  { %v125_v11 = vadd.f32 %v124_v9, %v62_v4  ;;  %v126_v12 = vpop.f32.mrb[2].mxu0 }
  0xe0   :  { %v143_v13 = vadd.f32 %v136_v3, %v123_v8  ;;  %v127_v14 = vadd.f32 %v126_v12, %v63_v7  ;;  %v128_v15 = vpop.f32.mrb[3].mxu0 }
  0xe1   :  { %v129_v16 = vadd.f32 %v128_v15, %v64_v10  ;;  %v144_v17 = vadd.f32 %v140_v6, %v125_v11 }
  0xe2   :  { %v145_v18 = vadd.f32 %v136_v3, %v127_v14  ;;  %v147_v20 = vmax.f32 %v143_v13, 0.0 }
  0xe3   :  { %v146_v19 = vadd.f32 %v140_v6, %v129_v16  ;;  %v148_v22 = vmax.f32 %v144_v17, 0.0 }
  0xe4   :  { %v149_v21 = vmax.f32 %v145_v18, 0.0 }
  0xe5   :  { %v150_v23 = vmax.f32 %v146_v19, 0.0 }
  0xe6   :  { %v151_v24 = vpack.c.bf16 %v149_v21, %v147_v20 }
  0xe7   :  { %v152_v25 = vpack.c.bf16 %v150_v23, %v148_v22 }
  0xe9   :  { %389 = vmatprep.mubr.bf16.mxu1 %v152_v25 }
  0xea   :  { %390 = vmatmul.mubr.bf16.vlgmr.msra.gmra.mrb[0].mxu1 %v151_v24 }
 0x1bd   :  { %v391_v34 = vpop.f32.mrb[0].mxu1 }
 0x1be   :  { %v392_v35 = vadd.f32 %v391_v34, %v190_v32  ;;  %v393_v36 = vpop.f32.mrb[1].mxu1 }
 0x1bf   :  { %v394_v37 = vadd.f32 %v393_v36, %v194_v33  ;;  %v395_v38 = vpop.f32.mrb[2].mxu1 }
 0x1c0   :  { %v396_v39 = vadd.f32 %v395_v38, %v190_v32  ;;  %v397_v40 = vpop.f32.mrb[3].mxu1  ;;  %v400_v42 = vmax.f32 %v392_v35, 0.0 }
 0x1c1   :  { %v398_v41 = vadd.f32 %v397_v40, %v194_v33  ;;  %v401_v44 = vmax.f32 %v394_v37, 0.0 }
 0x1c2   :  { %v402_v43 = vmax.f32 %v396_v39, 0.0 }
 0x1c3   :  { %v403_v45 = vmax.f32 %v398_v41, 0.0 }
 0x1c4   :  { %v404_v46 = vpack.c.bf16 %v402_v43, %v400_v42 }
 0x1c5   :  { %v405_v47 = vpack.c.bf16 %v403_v45, %v401_v44 }
 0x1c7   :  { %573 = vmatprep.mubr.bf16.mxu0 %v405_v47 }
 0x1c8   :  { %574 = vmatmul.mubr.bf16.vlgmr.msra.gmra.mrb[4].mxu0 %v404_v46 }
 0x29b   :  { %v655_v48 = vpop.f32.mrb[4].mxu0 }
 0x29c   :  { %v656_v50 = vpop.f32.mrb[5].mxu0 }
 0x29d   :  { %v657_v51 = vadd.f32 %v656_v50, %v655_v48  ;;  %v658_v52 = vpop.f32.mrb[6].mxu0 }
 0x29e   :  { %v659_v53 = vpop.f32.mrb[7].mxu0 }
 0x29f   :  { %v576_v54 = vadd.f32 %v657_v51, %v622_v49  ;;  %v660_v55 = vadd.f32 %v659_v53, %v658_v52 }
 0x2a1   :  { %582 = vst [vmem:[%s966_s9] sm:$0xff] %v576_v54  ;;  %v579_v56 = vadd.f32 %v660_v55, %v622_v49 }
 0x2a3   :  { %583 = vst [vmem:[%s966_s9 + $0x8] sm:$0xff] %v579_v56 }

</bundles_post_ra>
